<compile_context>
chip_gen: v5e
topology: v5e:2x2
jax: 0.10.0
libtpu: 0.0.40
codegen_flags: <defaults>
</compile_context>

<pallas_src>
import jax
import jax.numpy as jnp
from jax.experimental import pallas as pl
from jax.experimental.pallas import tpu as pltpu

NUM_ACTIONS = 74
CARD_FEATS = 54          # hand / last_card / cards_pot vectors
EXTRA_FEATS = 10         # 5 scalars + 4 suites one-hot + pass_flag
IN_FEATS = 3 * CARD_FEATS + EXTRA_FEATS   # 172
H1 = 256                 # 250 padded to 256 (lane-dense)
H2 = 256                 # 175 padded to 256
H3 = 256                 # 130 padded to 256
OUT_PAD = 128            # 74 padded to 128 (lane-dense output stores)
DEFAULT_TB = 1024        # max batch tile; keeps VMEM inside v5e's 16 MiB scoped default


def _round_up(x, m):
    return (x + m - 1) // m * m


def _cdiv(a, b):
    return (a + b - 1) // b


def _pad2(a, rows, cols):
    return jnp.pad(a, ((0, rows - a.shape[0]), (0, cols - a.shape[1])))


def pack_params(params):
    """Fold the three input projections into layer 1, pad lane-dense, cast weights to bf16.

    Run this ONCE (outside the per-step path) and reuse the returned pytree.
    """
    f32 = jnp.float32
    wh, bh = params["wh"].astype(f32), params["bh"].astype(f32)   # [54,30], [1,30]
    wl, bl = params["wl"].astype(f32), params["bl"].astype(f32)   # [54,20], [1,20]
    wp, bp = params["wp"].astype(f32), params["bp"].astype(f32)   # [54,30], [1,30]
    w1, b1 = params["w1"].astype(f32), params["b1"].astype(f32)   # [90,250], [1,250]

    # block_diag(wh, wl, wp, I_10) @ w1  folds projections + feature concat into W1.
    P = jnp.zeros((IN_FEATS, 90), f32)
    P = P.at[0:54, 0:30].set(wh)
    P = P.at[54:108, 30:50].set(wl)
    P = P.at[108:162, 50:80].set(wp)
    P = P.at[162:172, 80:90].set(jnp.eye(EXTRA_FEATS, dtype=f32))
    w1c = _pad2(P @ w1, IN_FEATS, H1)                               # [172, 256] f32
    bias_feats = jnp.concatenate(
        [bh, bl, bp, jnp.zeros((1, EXTRA_FEATS), f32)], axis=1)     # [1, 90]
    b1c = _pad2(b1 + bias_feats @ w1, 1, H1)                        # [1, 256]

    bf16 = jnp.bfloat16
    return dict(
        # Row-slices of the folded W1, one per input stream (no host concat needed).
        w1_hand=w1c[0:54].astype(bf16),
        w1_last=w1c[54:108].astype(bf16),
        w1_pot=w1c[108:162].astype(bf16),
        w1_ext=w1c[162:172].astype(bf16),
        b1=b1c,                                                     # biases stay f32
        w2=_pad2(params["w2"].astype(f32), H1, H2).astype(bf16),
        b2=_pad2(params["b2"].astype(f32), 1, H2),
        w3=_pad2(params["w3"].astype(f32), H2, H3).astype(bf16),
        b3=_pad2(params["b3"].astype(f32), 1, H3),
        wo=_pad2(params["wo"].astype(f32), H3, OUT_PAD).astype(bf16),
        bo=_pad2(params["bo"].astype(f32), 1, OUT_PAD),
    )


def _mlp_kernel(hand_ref, last_ref, pot_ref, ext_ref,
                w1h_ref, w1l_ref, w1p_ref, w1e_ref, b1_ref,
                w2_ref, b2_ref, w3_ref, b3_ref, wo_ref, bo_ref, out_ref):
    f32, bf16 = jnp.float32, jnp.bfloat16

    # Layer 1: four partial bf16 dots (f32 accumulation) against row-slices of
    # the folded W1 -- replaces the host-side concat of the four input streams.
    h = jnp.dot(hand_ref[...].astype(bf16), w1h_ref[...], preferred_element_type=f32)
    h = h + jnp.dot(last_ref[...].astype(bf16), w1l_ref[...], preferred_element_type=f32)
    h = h + jnp.dot(pot_ref[...].astype(bf16), w1p_ref[...], preferred_element_type=f32)
    h = h + jnp.dot(ext_ref[...].astype(bf16), w1e_ref[...], preferred_element_type=f32)
    h = jnp.maximum(h + b1_ref[...], 0.0).astype(bf16)    # bias/ReLU in f32, feed MXU bf16

    h = jnp.dot(h, w2_ref[...], preferred_element_type=f32)
    h = jnp.maximum(h + b2_ref[...], 0.0).astype(bf16)

    h = jnp.dot(h, w3_ref[...], preferred_element_type=f32)
    h = jnp.maximum(h + b3_ref[...], 0.0).astype(bf16)

    out = jnp.dot(h, wo_ref[...], preferred_element_type=f32) + bo_ref[...]
    out_ref[...] = out.astype(out_ref.dtype)


def _choose_tb(batch, tb_cap):
    """Batch tile: >=2 grid steps when possible (v7x megacore + pipeline overlap),
    tight against the batch (minimal dead rows), capped for VMEM (v5e 16 MiB)."""
    rows = _round_up(max(batch, 1), 8)
    n_steps = max(2, _cdiv(rows, tb_cap))
    if rows >= 2048:                       # deeper pipeline for big batches
        n_steps = max(n_steps, 4)
    n_steps = max(1, min(n_steps, rows // 8))
    return min(_round_up(_cdiv(rows, n_steps), 8), tb_cap)


def macao_forward(hand, last_card, cards_pot, extras, packed,
                  tb=DEFAULT_TB, slice_output=True, vmem_limit_bytes=None):
    """hand/last_card/cards_pot: [B,54]; extras: [B,10]; packed: pack_params(...)."""
    B = hand.shape[0]
    TB = _choose_tb(B, tb)
    grid = (_cdiv(B, TB),)   # ragged last tile is fine: OOB output rows are dropped

    act_map = lambda i: (i, 0)
    res_map = lambda i: (0, 0)   # weights / biases stay resident across grid steps

    in_specs = [
        pl.BlockSpec((TB, CARD_FEATS), act_map),
        pl.BlockSpec((TB, CARD_FEATS), act_map),
        pl.BlockSpec((TB, CARD_FEATS), act_map),
        pl.BlockSpec((TB, EXTRA_FEATS), act_map),
        pl.BlockSpec((CARD_FEATS, H1), res_map),
        pl.BlockSpec((CARD_FEATS, H1), res_map),
        pl.BlockSpec((CARD_FEATS, H1), res_map),
        pl.BlockSpec((EXTRA_FEATS, H1), res_map),
        pl.BlockSpec((1, H1), res_map),
        pl.BlockSpec((H1, H2), res_map),
        pl.BlockSpec((1, H2), res_map),
        pl.BlockSpec((H2, H3), res_map),
        pl.BlockSpec((1, H3), res_map),
        pl.BlockSpec((H3, OUT_PAD), res_map),
        pl.BlockSpec((1, OUT_PAD), res_map),
    ]

    out = pl.pallas_call(
        _mlp_kernel,
        out_shape=jax.ShapeDtypeStruct((B, OUT_PAD), jnp.float32),
        grid=grid,
        in_specs=in_specs,
        out_specs=pl.BlockSpec((TB, OUT_PAD), act_map),
        compiler_params=pltpu.CompilerParams(
            dimension_semantics=("parallel",),
            vmem_limit_bytes=vmem_limit_bytes),
    )(hand, last_card, cards_pot, extras,
      packed["w1_hand"], packed["w1_last"], packed["w1_pot"], packed["w1_ext"],
      packed["b1"], packed["w2"], packed["b2"], packed["w3"], packed["b3"],
      packed["wo"], packed["bo"])

    if slice_output:
        out = out[:, :NUM_ACTIONS]
    return out


def _linear_init(key, fan_in, fan_out):
    # PyTorch nn.Linear default init: U(-1/sqrt(fan_in), 1/sqrt(fan_in))
    kw, kb = jax.random.split(key)
    bound = 1.0 / (fan_in ** 0.5)
    w = jax.random.uniform(kw, (fan_in, fan_out), jnp.float32, -bound, bound)
    b = jax.random.uniform(kb, (1, fan_out), jnp.float32, -bound, bound)
    return w, b


def make_params(key):
    keys = jax.random.split(key, 7)
    wh, bh = _linear_init(keys[0], 54, 30)    # hand_proj
    wl, bl = _linear_init(keys[1], 54, 20)    # last_card_proj
    wp, bp = _linear_init(keys[2], 54, 30)    # pot_proj
    w1, b1 = _linear_init(keys[3], 90, 250)   # hidden_layers[0]
    w2, b2 = _linear_init(keys[4], 250, 175)  # hidden_layers[2]
    w3, b3 = _linear_init(keys[5], 175, 130)  # hidden_layers[4]
    wo, bo = _linear_init(keys[6], 130, NUM_ACTIONS)  # output_layer
    return dict(wh=wh, bh=bh, wl=wl, bl=bl, wp=wp, bp=bp,
                w1=w1, b1=b1, w2=w2, b2=b2, w3=w3, b3=b3, wo=wo, bo=bo)


def reference_forward(hand, last_card, cards_pot, extras, params):
    """Pure-JAX f32 reference matching the PyTorch forward semantics."""
    hp = hand @ params["wh"] + params["bh"]
    lp = last_card @ params["wl"] + params["bl"]
    pp = cards_pot @ params["wp"] + params["bp"]
    feats = jnp.concatenate([hp, lp, pp, extras], axis=1)  # [B, 90]
    h = jax.nn.relu(feats @ params["w1"] + params["b1"])
    h = jax.nn.relu(h @ params["w2"] + params["b2"])
    h = jax.nn.relu(h @ params["w3"] + params["b3"])
    return h @ params["wo"] + params["bo"]


if __name__ == "__main__":
    key = jax.random.PRNGKey(0)
    k_param, k_hand, k_last, k_pot, k_scal, k_suites = jax.random.split(key, 6)

    B = 4
    params = make_params(k_param)
    packed = pack_params(params)            # hoisted: computed once, reused per call

    # Per-sample inputs (the PyTorch forward zips/stacks a list of tuples; we
    # build the batched arrays directly on the host).
    hand = (jax.random.uniform(k_hand, (B, 54)) < 0.15).astype(jnp.float32)       # [B,54]
    last_card = jax.nn.one_hot(
        jax.random.randint(k_last, (B,), 0, 54), 54, dtype=jnp.float32)           # [B,54]
    cards_pot = (jax.random.uniform(k_pot, (B, 54)) < 0.25).astype(jnp.float32)   # [B,54]

    # Scalar game-state features: drawing_contest, turns_contest, player_turns,
    # adv_turns, adv_len (each [B,1]), suites [B,4], pass_flag [B,1] -> 10 dims
    scalars = jax.random.uniform(k_scal, (B, 5), jnp.float32, 0.0, 3.0)
    suites = jax.nn.one_hot(jax.random.randint(k_suites, (B,), 0, 4), 4, dtype=jnp.float32)
    pass_flag = jnp.zeros((B, 1), jnp.float32)
    extras = jnp.concatenate([scalars, suites, pass_flag], axis=1)  # [B, 10]

    fwd = jax.jit(macao_forward)
    out = fwd(hand, last_card, cards_pot, extras, packed)
    out = jax.block_until_ready(out)

    ref = reference_forward(hand, last_card, cards_pot, extras, params)
    assert out.shape == (B, NUM_ACTIONS)
    # bf16 operands / f32 accumulation: relax tolerance vs. the f32 reference.
    assert jnp.allclose(out, ref, atol=5e-2, rtol=5e-2), "Pallas output mismatch vs reference"

    print("KERNEL_OK")
</pallas_src>

<mosaic_0001>
module attributes {stable_mosaic.version = 11 : i64} {
  func.func @_mlp_kernel(%arg0: i32, %arg1: memref<8x54xf32, #tpu.memory_space<vmem>>, %arg2: memref<8x54xf32, #tpu.memory_space<vmem>>, %arg3: memref<8x54xf32, #tpu.memory_space<vmem>>, %arg4: memref<8x10xf32, #tpu.memory_space<vmem>>, %arg5: memref<54x256xbf16, #tpu.memory_space<vmem>>, %arg6: memref<54x256xbf16, #tpu.memory_space<vmem>>, %arg7: memref<54x256xbf16, #tpu.memory_space<vmem>>, %arg8: memref<10x256xbf16, #tpu.memory_space<vmem>>, %arg9: memref<1x256xf32, #tpu.memory_space<vmem>>, %arg10: memref<256x256xbf16, #tpu.memory_space<vmem>>, %arg11: memref<1x256xf32, #tpu.memory_space<vmem>>, %arg12: memref<256x256xbf16, #tpu.memory_space<vmem>>, %arg13: memref<1x256xf32, #tpu.memory_space<vmem>>, %arg14: memref<256x128xbf16, #tpu.memory_space<vmem>>, %arg15: memref<1x128xf32, #tpu.memory_space<vmem>>, %arg16: memref<8x128xf32, #tpu.memory_space<vmem>>) attributes {dimension_semantics = [#tpu.dimension_semantics<parallel>], iteration_bounds = array<i64: 1>, scalar_prefetch = 0 : i64, scratch_operands = 0 : i64, tpu.core_type = #tpu.core_type<tc>, window_params = [{transform_indices = @transform_0, window_bounds = array<i64: 8, 54>}, {transform_indices = @transform_1, window_bounds = array<i64: 8, 54>}, {transform_indices = @transform_2, window_bounds = array<i64: 8, 54>}, {transform_indices = @transform_3, window_bounds = array<i64: 8, 10>}, {pipeline_mode = #tpu.pipeline_mode<synchronous>, transform_indices = @transform_4, window_bounds = array<i64: 54, 256>}, {pipeline_mode = #tpu.pipeline_mode<synchronous>, transform_indices = @transform_5, window_bounds = array<i64: 54, 256>}, {pipeline_mode = #tpu.pipeline_mode<synchronous>, transform_indices = @transform_6, window_bounds = array<i64: 54, 256>}, {pipeline_mode = #tpu.pipeline_mode<synchronous>, transform_indices = @transform_7, window_bounds = array<i64: 10, 256>}, {pipeline_mode = #tpu.pipeline_mode<synchronous>, transform_indices = @transform_8, window_bounds = array<i64: 1, 256>}, {pipeline_mode = #tpu.pipeline_mode<synchronous>, transform_indices = @transform_9, window_bounds = array<i64: 256, 256>}, {pipeline_mode = #tpu.pipeline_mode<synchronous>, transform_indices = @transform_10, window_bounds = array<i64: 1, 256>}, {pipeline_mode = #tpu.pipeline_mode<synchronous>, transform_indices = @transform_11, window_bounds = array<i64: 256, 256>}, {pipeline_mode = #tpu.pipeline_mode<synchronous>, transform_indices = @transform_12, window_bounds = array<i64: 1, 256>}, {pipeline_mode = #tpu.pipeline_mode<synchronous>, transform_indices = @transform_13, window_bounds = array<i64: 256, 128>}, {pipeline_mode = #tpu.pipeline_mode<synchronous>, transform_indices = @transform_14, window_bounds = array<i64: 1, 128>}, {transform_indices = @transform_15, window_bounds = array<i64: 8, 128>}]} {
    %c0 = arith.constant 0 : index
    %c0_0 = arith.constant 0 : index
    %0 = vector.load %arg1[%c0, %c0_0] : memref<8x54xf32, #tpu.memory_space<vmem>>, vector<8x54xf32>
    %1 = arith.truncf %0 : vector<8x54xf32> to vector<8x54xbf16>
    %c0_1 = arith.constant 0 : index
    %c0_2 = arith.constant 0 : index
    %2 = vector.load %arg5[%c0_1, %c0_2] : memref<54x256xbf16, #tpu.memory_space<vmem>>, vector<54x256xbf16>
    %cst = arith.constant dense<0.000000e+00> : vector<8x256xf32>
    %3 = tpu.matmul %1, %2, %cst {dimension_numbers = #tpu.dot_dimension_numbers<[1], [0], [0], [1], [0, 0, 1, 1], [], []>} : vector<8x54xbf16>, vector<54x256xbf16>, vector<8x256xf32> -> vector<8x256xf32>
    %c0_3 = arith.constant 0 : index
    %c0_4 = arith.constant 0 : index
    %4 = vector.load %arg2[%c0_3, %c0_4] : memref<8x54xf32, #tpu.memory_space<vmem>>, vector<8x54xf32>
    %5 = arith.truncf %4 : vector<8x54xf32> to vector<8x54xbf16>
    %c0_5 = arith.constant 0 : index
    %c0_6 = arith.constant 0 : index
    %6 = vector.load %arg6[%c0_5, %c0_6] : memref<54x256xbf16, #tpu.memory_space<vmem>>, vector<54x256xbf16>
    %cst_7 = arith.constant dense<0.000000e+00> : vector<8x256xf32>
    %7 = tpu.matmul %5, %6, %cst_7 {dimension_numbers = #tpu.dot_dimension_numbers<[1], [0], [0], [1], [0, 0, 1, 1], [], []>} : vector<8x54xbf16>, vector<54x256xbf16>, vector<8x256xf32> -> vector<8x256xf32>
    %8 = arith.addf %3, %7 : vector<8x256xf32>
    %c0_8 = arith.constant 0 : index
    %c0_9 = arith.constant 0 : index
    %9 = vector.load %arg3[%c0_8, %c0_9] : memref<8x54xf32, #tpu.memory_space<vmem>>, vector<8x54xf32>
    %10 = arith.truncf %9 : vector<8x54xf32> to vector<8x54xbf16>
    %c0_10 = arith.constant 0 : index
    %c0_11 = arith.constant 0 : index
    %11 = vector.load %arg7[%c0_10, %c0_11] : memref<54x256xbf16, #tpu.memory_space<vmem>>, vector<54x256xbf16>
    %cst_12 = arith.constant dense<0.000000e+00> : vector<8x256xf32>
    %12 = tpu.matmul %10, %11, %cst_12 {dimension_numbers = #tpu.dot_dimension_numbers<[1], [0], [0], [1], [0, 0, 1, 1], [], []>} : vector<8x54xbf16>, vector<54x256xbf16>, vector<8x256xf32> -> vector<8x256xf32>
    %13 = arith.addf %8, %12 : vector<8x256xf32>
    %c0_13 = arith.constant 0 : index
    %c0_14 = arith.constant 0 : index
    %14 = vector.load %arg4[%c0_13, %c0_14] : memref<8x10xf32, #tpu.memory_space<vmem>>, vector<8x10xf32>
    %15 = arith.truncf %14 : vector<8x10xf32> to vector<8x10xbf16>
    %c0_15 = arith.constant 0 : index
    %c0_16 = arith.constant 0 : index
    %16 = vector.load %arg8[%c0_15, %c0_16] : memref<10x256xbf16, #tpu.memory_space<vmem>>, vector<10x256xbf16>
    %cst_17 = arith.constant dense<0.000000e+00> : vector<8x256xf32>
    %17 = tpu.matmul %15, %16, %cst_17 {dimension_numbers = #tpu.dot_dimension_numbers<[1], [0], [0], [1], [0, 0, 1, 1], [], []>} : vector<8x10xbf16>, vector<10x256xbf16>, vector<8x256xf32> -> vector<8x256xf32>
    %18 = arith.addf %13, %17 : vector<8x256xf32>
    %c0_18 = arith.constant 0 : index
    %c0_19 = arith.constant 0 : index
    %19 = vector.load %arg9[%c0_18, %c0_19] : memref<1x256xf32, #tpu.memory_space<vmem>>, vector<1x256xf32>
    %20 = vector.broadcast %19 : vector<1x256xf32> to vector<8x256xf32>
    %21 = arith.addf %18, %20 : vector<8x256xf32>
    %cst_20 = arith.constant 0.000000e+00 : f32
    %22 = vector.broadcast %cst_20 : f32 to vector<8x256xf32>
    %23 = arith.maximumf %21, %22 : vector<8x256xf32>
    %24 = arith.truncf %23 : vector<8x256xf32> to vector<8x256xbf16>
    %c0_21 = arith.constant 0 : index
    %c0_22 = arith.constant 0 : index
    %25 = vector.load %arg10[%c0_21, %c0_22] : memref<256x256xbf16, #tpu.memory_space<vmem>>, vector<256x256xbf16>
    %cst_23 = arith.constant dense<0.000000e+00> : vector<8x256xf32>
    %26 = tpu.matmul %24, %25, %cst_23 {dimension_numbers = #tpu.dot_dimension_numbers<[1], [0], [0], [1], [0, 0, 1, 1], [], []>} : vector<8x256xbf16>, vector<256x256xbf16>, vector<8x256xf32> -> vector<8x256xf32>
    %c0_24 = arith.constant 0 : index
    %c0_25 = arith.constant 0 : index
    %27 = vector.load %arg11[%c0_24, %c0_25] : memref<1x256xf32, #tpu.memory_space<vmem>>, vector<1x256xf32>
    %28 = vector.broadcast %27 : vector<1x256xf32> to vector<8x256xf32>
    %29 = arith.addf %26, %28 : vector<8x256xf32>
    %cst_26 = arith.constant 0.000000e+00 : f32
    %30 = vector.broadcast %cst_26 : f32 to vector<8x256xf32>
    %31 = arith.maximumf %29, %30 : vector<8x256xf32>
    %32 = arith.truncf %31 : vector<8x256xf32> to vector<8x256xbf16>
    %c0_27 = arith.constant 0 : index
    %c0_28 = arith.constant 0 : index
    %33 = vector.load %arg12[%c0_27, %c0_28] : memref<256x256xbf16, #tpu.memory_space<vmem>>, vector<256x256xbf16>
    %cst_29 = arith.constant dense<0.000000e+00> : vector<8x256xf32>
    %34 = tpu.matmul %32, %33, %cst_29 {dimension_numbers = #tpu.dot_dimension_numbers<[1], [0], [0], [1], [0, 0, 1, 1], [], []>} : vector<8x256xbf16>, vector<256x256xbf16>, vector<8x256xf32> -> vector<8x256xf32>
    %c0_30 = arith.constant 0 : index
    %c0_31 = arith.constant 0 : index
    %35 = vector.load %arg13[%c0_30, %c0_31] : memref<1x256xf32, #tpu.memory_space<vmem>>, vector<1x256xf32>
    %36 = vector.broadcast %35 : vector<1x256xf32> to vector<8x256xf32>
    %37 = arith.addf %34, %36 : vector<8x256xf32>
    %cst_32 = arith.constant 0.000000e+00 : f32
    %38 = vector.broadcast %cst_32 : f32 to vector<8x256xf32>
    %39 = arith.maximumf %37, %38 : vector<8x256xf32>
    %40 = arith.truncf %39 : vector<8x256xf32> to vector<8x256xbf16>
    %c0_33 = arith.constant 0 : index
    %c0_34 = arith.constant 0 : index
    %41 = vector.load %arg14[%c0_33, %c0_34] : memref<256x128xbf16, #tpu.memory_space<vmem>>, vector<256x128xbf16>
    %cst_35 = arith.constant dense<0.000000e+00> : vector<8x128xf32>
    %42 = tpu.matmul %40, %41, %cst_35 {dimension_numbers = #tpu.dot_dimension_numbers<[1], [0], [0], [1], [0, 0, 1, 1], [], []>} : vector<8x256xbf16>, vector<256x128xbf16>, vector<8x128xf32> -> vector<8x128xf32>
    %c0_36 = arith.constant 0 : index
    %c0_37 = arith.constant 0 : index
    %43 = vector.load %arg15[%c0_36, %c0_37] : memref<1x128xf32, #tpu.memory_space<vmem>>, vector<1x128xf32>
    %44 = vector.broadcast %43 : vector<1x128xf32> to vector<8x128xf32>
    %45 = arith.addf %42, %44 : vector<8x128xf32>
    %c0_38 = arith.constant 0 : index
    %c0_39 = arith.constant 0 : index
    %46 = vector.load %arg16[%c0_38, %c0_39] : memref<8x128xf32, #tpu.memory_space<vmem>>, vector<8x128xf32>
    tpu.vector_store %arg16[%c0_38, %c0_39], %45 {strides = array<i32>} : memref<8x128xf32, #tpu.memory_space<vmem>>, vector<8x128xf32>,
    return
  }
  func.func @transform_0(%arg0: i32) -> (i32, i32) {
    %c0_i32 = arith.constant 0 : i32
    %c0_i32_0 = arith.constant 0 : i32
    return %arg0, %c0_i32 : i32, i32
  }
  func.func @transform_1(%arg0: i32) -> (i32, i32) {
    %c0_i32 = arith.constant 0 : i32
    %c0_i32_0 = arith.constant 0 : i32
    return %arg0, %c0_i32 : i32, i32
  }
  func.func @transform_2(%arg0: i32) -> (i32, i32) {
    %c0_i32 = arith.constant 0 : i32
    %c0_i32_0 = arith.constant 0 : i32
    return %arg0, %c0_i32 : i32, i32
  }
  func.func @transform_3(%arg0: i32) -> (i32, i32) {
    %c0_i32 = arith.constant 0 : i32
    %c0_i32_0 = arith.constant 0 : i32
    return %arg0, %c0_i32 : i32, i32
  }
  func.func @transform_4(%arg0: i32) -> (i32, i32) {
    %c0_i32 = arith.constant 0 : i32
    %c0_i32_0 = arith.constant 0 : i32
    %c0_i32_1 = arith.constant 0 : i32
    return %c0_i32, %c0_i32_0 : i32, i32
  }
  func.func @transform_5(%arg0: i32) -> (i32, i32) {
    %c0_i32 = arith.constant 0 : i32
    %c0_i32_0 = arith.constant 0 : i32
    %c0_i32_1 = arith.constant 0 : i32
    return %c0_i32, %c0_i32_0 : i32, i32
  }
  func.func @transform_6(%arg0: i32) -> (i32, i32) {
    %c0_i32 = arith.constant 0 : i32
    %c0_i32_0 = arith.constant 0 : i32
    %c0_i32_1 = arith.constant 0 : i32
    return %c0_i32, %c0_i32_0 : i32, i32
  }
  func.func @transform_7(%arg0: i32) -> (i32, i32) {
    %c0_i32 = arith.constant 0 : i32
    %c0_i32_0 = arith.constant 0 : i32
    %c0_i32_1 = arith.constant 0 : i32
    return %c0_i32, %c0_i32_0 : i32, i32
  }
  func.func @transform_8(%arg0: i32) -> (i32, i32) {
    %c0_i32 = arith.constant 0 : i32
    %c0_i32_0 = arith.constant 0 : i32
    %c0_i32_1 = arith.constant 0 : i32
    return %c0_i32, %c0_i32_0 : i32, i32
  }
  func.func @transform_9(%arg0: i32) -> (i32, i32) {
    %c0_i32 = arith.constant 0 : i32
    %c0_i32_0 = arith.constant 0 : i32
    %c0_i32_1 = arith.constant 0 : i32
    return %c0_i32, %c0_i32_0 : i32, i32
  }
  func.func @transform_10(%arg0: i32) -> (i32, i32) {
    %c0_i32 = arith.constant 0 : i32
    %c0_i32_0 = arith.constant 0 : i32
    %c0_i32_1 = arith.constant 0 : i32
    return %c0_i32, %c0_i32_0 : i32, i32
  }
  func.func @transform_11(%arg0: i32) -> (i32, i32) {
    %c0_i32 = arith.constant 0 : i32
    %c0_i32_0 = arith.constant 0 : i32
    %c0_i32_1 = arith.constant 0 : i32
    return %c0_i32, %c0_i32_0 : i32, i32
  }
  func.func @transform_12(%arg0: i32) -> (i32, i32) {
    %c0_i32 = arith.constant 0 : i32
    %c0_i32_0 = arith.constant 0 : i32
    %c0_i32_1 = arith.constant 0 : i32
    return %c0_i32, %c0_i32_0 : i32, i32
  }
  func.func @transform_13(%arg0: i32) -> (i32, i32) {
    %c0_i32 = arith.constant 0 : i32
    %c0_i32_0 = arith.constant 0 : i32
    %c0_i32_1 = arith.constant 0 : i32
    return %c0_i32, %c0_i32_0 : i32, i32
  }
  func.func @transform_14(%arg0: i32) -> (i32, i32) {
    %c0_i32 = arith.constant 0 : i32
    %c0_i32_0 = arith.constant 0 : i32
    %c0_i32_1 = arith.constant 0 : i32
    return %c0_i32, %c0_i32_0 : i32, i32
  }
  func.func @transform_15(%arg0: i32) -> (i32, i32) {
    %c0_i32 = arith.constant 0 : i32
    %c0_i32_0 = arith.constant 0 : i32
    return %arg0, %c0_i32 : i32, i32
  }
}

</mosaic_0001>

<bundles_post_ra>
// kernel: macao_forward.1
= control target key start
LH: loop header
LB: loop body
LE: loop exit
PB: predicated region body
PF: predicated region fallthrough
CT: control target
= control target key end

     0   :  { %20 = vsyncpa [#allocation3], 0  ;;  %s2292_s0 = inlined_call_operand.hbm [shape: f32[4,54], index: 0, kind: input, shape index: {}]   ;;  %s2293_s1 = inlined_call_operand.hbm [shape: f32[4,54], index: 1, kind: input, shape index: {}]   ;;  %s2294_s2 = inlined_call_operand.hbm [shape: f32[4,54], index: 2, kind: input, shape index: {}]   ;;  %s2295_s3 = inlined_call_operand.hbm [shape: f32[4,10], index: 3, kind: input, shape index: {}]   ;;  %s2296_s4 = inlined_call_operand.hbm [shape: bf16[54,256], index: 4, kind: input, shape index: {}]   ;;  %s2297_s5 = inlined_call_operand.hbm [shape: bf16[54,256], index: 5, kind: input, shape index: {}]   ;;  %s2298_s6 = inlined_call_operand.hbm [shape: bf16[54,256], index: 6, kind: input, shape index: {}]   ;;  %s2299_s7 = inlined_call_operand.hbm [shape: bf16[10,256], index: 7, kind: input, shape index: {}]   ;;  %s2300_s8 = inlined_call_operand.vmem [shape: f32[1,256], index: 8, kind: input, shape index: {}]   ;;  %s2301_s9 = inlined_call_operand.hbm [shape: bf16[256,256], index: 9, kind: input, shape index: {}]   ;;  %s2302_s10 = inlined_call_operand.vmem [shape: f32[1,256], index: 10, kind: input, shape index: {}]   ;;  %s2303_s11 = inlined_call_operand.hbm [shape: bf16[256,256], index: 11, kind: input, shape index: {}]   ;;  %s2304_s12 = inlined_call_operand.hbm [shape: f32[1,256], index: 12, kind: input, shape index: {}]   ;;  %s2305_s13 = inlined_call_operand.hbm [shape: bf16[256,128], index: 13, kind: input, shape index: {}]   ;;  %s2306_s14 = inlined_call_operand.vmem [shape: f32[1,128], index: 14, kind: input, shape index: {}]   ;;  %s2307_s15 = inlined_call_operand.hbm [shape: f32[4,128], index: 15, kind: output, shape index: {}]  }
   0x1   :  { %21 = vsyncpa [#allocation6], 0 }
   0x2   :  { %22 = vsyncpa [#allocation9], 0 }
   0x3   :  { %23 = vsyncpa [#allocation12], 0 }
   0x4   :  { %24 = vsyncpa [#allocation15], 0 }
   0x5   :  { %25 = vsyncpa [#allocation18], 0 }
   0x6   :  { %26 = vsyncpa [#allocation21], 0 }
   0x7   :  { %27 = vsyncpa [#allocation4], 0 }
   0x8   :  { %31 = vsyncadd [#allocation3], 64  ;;  %s32_s20 = sshll.u32 %s2292_s0, 4  ;;  %s2087_s21 = smov [#allocation2]   ;;  %s33_s20 = int_to_ptr.hbm [resolvable:$true] %s32_s20 }
   0x9   :  { %s34_s22 = sshll.u32 %s2087_s21, 4  ;;  %s2088_s23 = smov 64   ;;  %s35_s22 = int_to_ptr.vmem [resolvable:$true] %s34_s22 }
   0xa   :  { %s2089_s24 = smov 4  }
   0xb   :  { %40 = dma.hbm_to_vmem [thread:$0]  %s33_s20, 64, %s35_s22, [#allocation3], %s2088_s23, %s2088_s23, %s2089_s24  }
   0xc   :  { %44 = vsyncadd [#allocation6], 64  ;;  %s45_s27 = sshll.u32 %s2293_s1, 4  ;;  %s2090_s28 = smov [#allocation5]   ;;  %s46_s27 = int_to_ptr.hbm [resolvable:$true] %s45_s27 }
   0xd   :  { %s47_s29 = sshll.u32 %s2090_s28, 4  ;;  %s48_s29 = int_to_ptr.vmem [resolvable:$true] %s47_s29 }
   0xe   :  { %53 = dma.hbm_to_vmem [thread:$0]  %s46_s27, 64, %s48_s29, [#allocation6], %s2088_s23, %s2088_s23, %s2089_s24  }
   0xf   :  { %57 = vsyncadd [#allocation6], 64  ;;  %s58_s16 = sshll.u32 %s2294_s2, 4  ;;  %s2091_s17 = smov [#allocation7]   ;;  %s59_s16 = int_to_ptr.hbm [resolvable:$true] %s58_s16 }
  0x10   :  { %s60_s18 = sshll.u32 %s2091_s17, 4  ;;  %s61_s18 = int_to_ptr.vmem [resolvable:$true] %s60_s18 }
  0x11   :  { %66 = dma.hbm_to_vmem [thread:$0]  %s59_s16, 64, %s61_s18, [#allocation6], %s2088_s23, %s2088_s23, %s2089_s24  }
  0x12   :  { %70 = vsyncadd [#allocation9], 64  ;;  %s71_s20 = sshll.u32 %s2295_s3, 4  ;;  %s2092_s21 = smov [#allocation8]   ;;  %s72_s20 = int_to_ptr.hbm [resolvable:$true] %s71_s20 }
  0x13   :  { %s73_s22 = sshll.u32 %s2092_s21, 4  ;;  %s97_s26 = sshll.u32 %s2297_s5, 4  ;;  %s74_s22 = int_to_ptr.vmem [resolvable:$true] %s73_s22  ;;  %s98_s26 = int_to_ptr.hbm [resolvable:$true] %s97_s26 }
  0x14   :  { %79 = dma.hbm_to_vmem [thread:$0]  %s72_s20, 64, %s74_s22, [#allocation9], %s2088_s23, %s2088_s23, %s2089_s24  }
  0x15   :  { %s2093_s27 = smov [#allocation11]   ;;  %s123_s30 = sshll.u32 %s2299_s7, 4  ;;  %s124_s30 = int_to_ptr.hbm [resolvable:$true] %s123_s30 }
  0x16   :  { %s99_s28 = sshll.u32 %s2093_s27, 4  ;;  %s2094_s3 = smov 128   ;;  %s100_s28 = int_to_ptr.vmem [resolvable:$true] %s99_s28 }
  0x17   :  { %s2095_s16 = smov 8   ;;  %s153_s1 = sshll.u32 %s2303_s11, 4  ;;  %s154_s1 = int_to_ptr.hbm [resolvable:$true] %s153_s1 }
  0x18   :  { %105 = dma.hbm_to_vmem [thread:$0]  %s98_s26, 896, %s100_s28, [#allocation12], %s2094_s3, %s2094_s3, %s2095_s16  }
  0x19   :  { %s2096_s5 = smov [#allocation14]   ;;  %s2097_s7 = smov [#allocation17]  }
  0x1a   :  { %s125_s19 = sshll.u32 %s2096_s5, 4  ;;  %s155_s20 = sshll.u32 %s2097_s7, 4  ;;  %s126_s19 = int_to_ptr.vmem [resolvable:$true] %s125_s19  ;;  %s156_s20 = int_to_ptr.vmem [resolvable:$true] %s155_s20 }
  0x1b   :  { %131 = dma.hbm_to_vmem [thread:$0]  %s124_s30, 256, %s126_s19, [#allocation15], %s2094_s3, %s2094_s3, %s2095_s16  }
  0x1c   :  { %s84_s2 = sshll.u32 %s2296_s4, 4  ;;  %s110_s26 = sshll.u32 %s2298_s6, 4  ;;  %s85_s2 = int_to_ptr.hbm [resolvable:$true] %s84_s2  ;;  %s111_s26 = int_to_ptr.hbm [resolvable:$true] %s110_s26 }
  0x1d   :  { %161 = dma.hbm_to_vmem [thread:$0]  %s154_s1, 4096, %s156_s20, [#allocation18], %s2094_s3, %s2094_s3, %s2095_s16  }
  0x1e   :  { %s2098_s27 = smov [#allocation10]   ;;  %s2099_s29 = smov [#allocation13]  }
  0x1f   :  { %s86_s28 = sshll.u32 %s2098_s27, 4  ;;  %s112_s4 = sshll.u32 %s2099_s29, 4  ;;  %s87_s28 = int_to_ptr.vmem [resolvable:$true] %s86_s28  ;;  %s113_s4 = int_to_ptr.vmem [resolvable:$true] %s112_s4 }
  0x20   :  { %92 = dma.hbm_to_vmem [thread:$0]  %s85_s2, 896, %s87_s28, [#allocation9], %s2094_s3, %s2094_s3, %s2095_s16  }
  0x21   :  { %s138_s17 = sshll.u32 %s2301_s9, 4  ;;  %s167_s1 = sshll.u32 %s2304_s12, 4  ;;  %s139_s17 = int_to_ptr.hbm [resolvable:$true] %s138_s17  ;;  %s168_s1 = int_to_ptr.hbm [resolvable:$true] %s167_s1 }
  0x22   :  { %118 = dma.hbm_to_vmem [thread:$0]  %s111_s26, 896, %s113_s4, [#allocation12], %s2094_s3, %s2094_s3, %s2095_s16  }
  0x23   :  { %s2100_s5 = smov [#allocation16]   ;;  %s2101_s7 = smov [#allocation19]  }
  0x24   :  { %s140_s19 = sshll.u32 %s2100_s5, 4  ;;  %s169_s9 = sshll.u32 %s2101_s7, 4  ;;  %s141_s19 = int_to_ptr.vmem [resolvable:$true] %s140_s19  ;;  %s170_s9 = int_to_ptr.vmem [resolvable:$true] %s169_s9 }
  0x25   :  { %146 = dma.hbm_to_vmem [thread:$0]  %s139_s17, 4096, %s141_s19, [#allocation15], %s2094_s3, %s2094_s3, %s2095_s16  }
  0x26   :  { %s177_s22 = sshll.u32 %s2305_s13, 4  ;;  %s2102_s2 = smov [#allocation20]   ;;  %s178_s22 = int_to_ptr.hbm [resolvable:$true] %s177_s22 }
  0x27   :  { %172 = dma.hbm_to_vmem [thread:$0]  %s168_s1, 32, %s170_s9, [#allocation18]  }
  0x28   :  { %s179_s11 = sshll.u32 %s2102_s2, 4  ;;  %s180_s11 = int_to_ptr.vmem [resolvable:$true] %s179_s11 }
  0x29   :  { %185 = dma.hbm_to_vmem [thread:$0]  %s178_s22, 2048, %s180_s11, [#allocation21], %s2088_s23, %s2088_s23, %s2089_s24  }
  0x2a   :  { %2071 = dma.done.wait [#allocation3], 128  }
  0x2b   :  { %2072 = vsyncadd [#allocation3], 4294967168 }
  0x2c   :  { %2073 = dma.done.wait [#allocation6], 256  }
  0x2d   :  { %2074 = vsyncadd [#allocation6], 4294967040 }
  0x2e   :  { %2075 = dma.done.wait [#allocation9], 1024  }
  0x2f   :  { %2076 = vsyncadd [#allocation9], 4294966272 }
  0x30   :  { %2077 = dma.done.wait [#allocation12], 1792  }
  0x31   :  { %2078 = vsyncadd [#allocation12], 4294965504 }
  0x32   :  { %2079 = dma.done.wait [#allocation15], 4352  }
  0x33   :  { %2080 = vsyncadd [#allocation15], 4294962944 }
  0x34   :  { %2081 = dma.done.wait [#allocation18], 4128  }
  0x35   :  { %2082 = vsyncadd [#allocation18], 4294963168 }
  0x36   :  { %2083 = dma.done.wait [#allocation21], 2048  }
  0x37   :  { %2084 = vsyncadd [#allocation21], 4294965248  ;;  %v254_v0 = vld [vmem:[#allocation11 + $0x30] sm:$0x77]  ;;  %vm294_vm0 = vcmask 1042432   ;;  %vm290_vm1 = vcmask 441344  }
  0x38   :  { %v274_v1 = vunpack.c.l.b16 %v254_v0  ;;  %v275_v2 = vunpack.c.h.b16 %v254_v0  ;;  %v1251_v3 = vld [vmem:[#allocation11 + $0x20] sm:$0xf]  ;;  %v1652_v6 = vld [vmem:[#allocation11 + $0x24] sm:$0xf0]  ;;  %v1651_v7 = vld [vmem:[#allocation11 + $0x24] sm:$0xf] }
  0x39   :  { %v1253_v8 = vld [vmem:[#allocation11 + $0x28] sm:$0xf0]  ;;  %v245_v11 = vld [vmem:[#allocation10 + $0x30] sm:$0x77]  ;;  %v1252_v12 = vor.u32 %v1652_v6, %v1251_v3  ;;  %v1243_v14 = vld [vmem:[#allocation11 + $0x10] sm:$0xf] }
  0x3a   :  { %v282_v4 = vpack.c.b16 %v274_v1, %v274_v1  ;;  %v283_v5 = vpack.c.b16 %v275_v2, %v275_v2  ;;  %v1256_v13 = vor.u32 %v1651_v7, %v1253_v8  ;;  %v1650_v15 = vld [vmem:[#allocation11 + $0x14] sm:$0xf0]  ;;  %v1649_v16 = vld [vmem:[#allocation11 + $0x14] sm:$0xf]  ;;  %v1245_v17 = vld [vmem:[#allocation11 + $0x18] sm:$0xf0]  ;;  %v346_v18 = vunpack.c.l.b16 %v245_v11 }
  0x3b   :  { %v347_v19 = vunpack.c.h.b16 %v245_v11  ;;  %v405_v20 = vld [vmem:[#allocation13 + $0x30] sm:$0x77]  ;;  %v1244_v23 = vor.u32 %v1650_v15, %v1243_v14  ;;  %v1248_v24 = vor.u32 %v1649_v16, %v1245_v17  ;;  %v1235_v25 = vld [vmem:[#allocation11] sm:$0xf]  ;;  %v1647_v27 = vld [vmem:[#allocation11 + $0x4] sm:$0xf] }
  0x3c   :  { %v296_v9 = vsel %vm294_vm0, %v282_v4, 0  ;;  %v299_v10 = vsel %vm294_vm0, %v283_v5, 0  ;;  %v425_v21 = vunpack.c.l.b16 %v405_v20  ;;  %v426_v22 = vunpack.c.h.b16 %v405_v20  ;;  %v1648_v26 = vld [vmem:[#allocation11 + $0x4] sm:$0xf0]  ;;  %v1237_v28 = vld [vmem:[#allocation11 + $0x8] sm:$0xf0] }
  0x3d   :  { %305 = vmatpush.bf16.msra.mxu2 %v296_v9  ;;  %318 = vmatpush.bf16.msra.mxu3 %v299_v10  ;;  %v354_v31 = vpack.c.b16 %v346_v18, %v346_v18  ;;  %v355_v32 = vpack.c.b16 %v347_v19, %v347_v19  ;;  %v1303_v33 = vld [vmem:[#allocation13 + $0x20] sm:$0xf]  ;;  %v1658_v34 = vld [vmem:[#allocation13 + $0x24] sm:$0xf0]  ;;  %v1657_v37 = vld [vmem:[#allocation13 + $0x24] sm:$0xf]  ;;  %v1236_v39 = vor.u32 %v1648_v26, %v1235_v25 }
  0x3e   :  { %v433_v29 = vpack.c.b16 %v425_v21, %v425_v21  ;;  %v434_v30 = vpack.c.b16 %v426_v22, %v426_v22  ;;  %v1305_v38 = vld [vmem:[#allocation13 + $0x28] sm:$0xf0]  ;;  %v1240_v40 = vor.u32 %v1647_v27, %v1237_v28  ;;  %v246_v41 = vld [vmem:[#allocation5] sm:$0xff]  ;;  %v1277_v42 = vld [vmem:[#allocation10 + $0x20] sm:$0xf]  ;;  %v1304_v48 = vor.u32 %v1658_v34, %v1303_v33 }
  0x3f   :  { %v1646_v43 = vld [vmem:[#allocation10 + $0x24] sm:$0xf0]  ;;  %v1645_v44 = vld [vmem:[#allocation10 + $0x24] sm:$0xf]  ;;  %v1279_v45 = vld [vmem:[#allocation10 + $0x28] sm:$0xf0]  ;;  %v1308_v49 = vor.u32 %v1657_v37, %v1305_v38  ;;  %v247_v51 = vpack.c.bf16 %v246_v41, %v246_v41 }
  0x40   :  { %v445_v35 = vsel %vm294_vm0, %v433_v29, 0  ;;  %v448_v36 = vsel %vm294_vm0, %v434_v30, 0  ;;  %v366_v46 = vsel %vm294_vm0, %v354_v31, 0  ;;  %v369_v47 = vsel %vm294_vm0, %v355_v32, 0  ;;  %v1295_v50 = vld [vmem:[#allocation13 + $0x10] sm:$0xf] }
  0x41   :  { %306 = vmatpush.bf16.msra.mxu2 %v1252_v12  ;;  %319 = vmatpush.bf16.msra.mxu3 %v1256_v13  ;;  %v1656_v52 = vld [vmem:[#allocation13 + $0x14] sm:$0xf0]  ;;  %v1655_v53 = vld [vmem:[#allocation13 + $0x14] sm:$0xf]  ;;  %v1297_v54 = vld [vmem:[#allocation13 + $0x18] sm:$0xf0]  ;;  %v1278_v55 = vor.u32 %v1646_v43, %v1277_v42  ;;  %v1282_v56 = vor.u32 %v1645_v44, %v1279_v45 }
  0x42   :  { %454 = vmatpush.bf16.msra.mxu0 %v445_v35  ;;  %467 = vmatpush.bf16.msra.mxu1 %v448_v36  ;;  %v1269_v57 = vld [vmem:[#allocation10 + $0x10] sm:$0xf]  ;;  %v1644_v58 = vld [vmem:[#allocation10 + $0x14] sm:$0xf0]  ;;  %v1643_v59 = vld [vmem:[#allocation10 + $0x14] sm:$0xf]  ;;  %v1296_v62 = vor.u32 %v1656_v52, %v1295_v50  ;;  %v1300_v63 = vor.u32 %v1655_v53, %v1297_v54 }
  0x43   :  { %v1271_v60 = vld [vmem:[#allocation10 + $0x18] sm:$0xf0]  ;;  %v1313_v61 = vld [vmem:[#allocation14] sm:$0xf]  ;;  %v1287_v0 = vld [vmem:[#allocation13] sm:$0xf]  ;;  %v1270_v7 = vor.u32 %v1644_v58, %v1269_v57 }
  0x44   :  { %v1654_v1 = vld [vmem:[#allocation13 + $0x4] sm:$0xf0]  ;;  %v1653_v2 = vld [vmem:[#allocation13 + $0x4] sm:$0xf]  ;;  %v1289_v3 = vld [vmem:[#allocation13 + $0x8] sm:$0xf0]  ;;  %v1274_v8 = vor.u32 %v1643_v59, %v1271_v60 }
  0x45   :  { %307 = vmatpush.bf16.msra.mxu2 %v1244_v23  ;;  %320 = vmatpush.bf16.msra.mxu3 %v1248_v24  ;;  %v1660_v4 = vld [vmem:[#allocation14 + $0x4] sm:$0x10]  ;;  %v1659_v5 = vld [vmem:[#allocation14 + $0x4] sm:$0xf]  ;;  %v1315_v6 = vld [vmem:[#allocation14 + $0x8] sm:$0x10]  ;;  %v1288_v13 = vor.u32 %v1654_v1, %v1287_v0  ;;  %v1292_v14 = vor.u32 %v1653_v2, %v1289_v3 }
  0x46   :  { %455 = vmatpush.bf16.msra.mxu0 %v1304_v48  ;;  %468 = vmatpush.bf16.msra.mxu1 %v1308_v49  ;;  %v1261_v9 = vld [vmem:[#allocation10] sm:$0xf]  ;;  %v1642_v10 = vld [vmem:[#allocation10 + $0x4] sm:$0xf0]  ;;  %v1641_v11 = vld [vmem:[#allocation10 + $0x4] sm:$0xf]  ;;  %v1314_v15 = vor.u32 %v1660_v4, %v1313_v61  ;;  %v1318_v16 = vor.u32 %v1659_v5, %v1315_v6 }
  0x47   :  { %v1263_v12 = vld [vmem:[#allocation10 + $0x8] sm:$0xf0]  ;;  %vm494_vm2 = vcmask 1044480   ;;  %v397_v17 = vld [vmem:[#allocation7] sm:$0xff]  ;;  %v1262_v18 = vor.u32 %v1642_v10, %v1261_v9  ;;  %v237_v23 = vld [vmem:[#allocation2] sm:$0xff]  ;;  %vm490_vm3 = vcmask 80896  }
  0x48   :  { %v1266_v19 = vor.u32 %v1641_v11, %v1263_v12  ;;  %v496_v20 = vsel %vm494_vm2, %v1314_v15, 0  ;;  %v499_v21 = vsel %vm494_vm2, %v1318_v16, 0  ;;  %v398_v22 = vpack.c.bf16 %v397_v17, %v397_v17  ;;  %v478_v25 = vld [vmem:[#allocation8] sm:$0xff]  ;;  %v1379_v27 = vld [vmem:[#allocation16 + $0x70] sm:$0xf] }
  0x49   :  { %308 = vmatpush.bf16.msra.mxu2 %v1236_v39  ;;  %321 = vmatpush.bf16.msra.mxu3 %v1240_v40  ;;  %v238_v24 = vpack.c.bf16 %v237_v23, %v237_v23  ;;  %v479_v26 = vpack.c.bf16 %v478_v25, %v478_v25  ;;  %v1676_v28 = vld [vmem:[#allocation16 + $0x74] sm:$0xf0]  ;;  %v1443_v29 = vld [vmem:[#allocation16 + $0xf0] sm:$0xf]  ;;  %v1675_v32 = vld [vmem:[#allocation16 + $0x74] sm:$0xf] }
  0x4a   :  { %456 = vmatpush.bf16.msra.mxu0 %v1296_v62  ;;  %469 = vmatpush.bf16.msra.mxu1 %v1300_v63  ;;  %v1380_v30 = vor.u32 %v1676_v28, %v1379_v27  ;;  %v1692_v31 = vld [vmem:[#allocation16 + $0xf4] sm:$0xf0]  ;;  %v1381_v33 = vld [vmem:[#allocation16 + $0x78] sm:$0xf0]  ;;  %v1691_v36 = vld [vmem:[#allocation16 + $0xf4] sm:$0xf] }
  0x4b   :  { %v1444_v34 = vor.u32 %v1692_v31, %v1443_v29  ;;  %v1384_v35 = vor.u32 %v1675_v32, %v1381_v33  ;;  %v1445_v37 = vld [vmem:[#allocation16 + $0xf8] sm:$0xf0]  ;;  %v1371_v38 = vld [vmem:[#allocation16 + $0x60] sm:$0xf]  ;;  %v1674_v40 = vld [vmem:[#allocation16 + $0x64] sm:$0xf0] }
  0x4c   :  { %1257 = vmatmul.msk.bf16.vlgmr.msra.gmra.mxu2 %vm290_vm1, %v247_v51  ;;  %1258 = vmatmul.msk.bf16.vlgmr.msra.gmra.mxu3 %vm290_vm1, %v247_v51  ;;  %v1448_v39 = vor.u32 %v1691_v36, %v1445_v37  ;;  %v1435_v41 = vld [vmem:[#allocation16 + $0xe0] sm:$0xf]  ;;  %v1690_v42 = vld [vmem:[#allocation16 + $0xe4] sm:$0xf0]  ;;  %v1372_v43 = vor.u32 %v1674_v40, %v1371_v38  ;;  %v1673_v45 = vld [vmem:[#allocation16 + $0x64] sm:$0xf] }
  0x4d   :  { %375 = vmatpush.bf16.msrb.mxu2 %v366_v46  ;;  %388 = vmatpush.bf16.msrb.mxu3 %v369_v47  ;;  %v1436_v44 = vor.u32 %v1690_v42, %v1435_v41  ;;  %v1373_v46 = vld [vmem:[#allocation16 + $0x68] sm:$0xf0]  ;;  %v1689_v47 = vld [vmem:[#allocation16 + $0xe4] sm:$0xf]  ;;  %v1363_v51 = vld [vmem:[#allocation16 + $0x50] sm:$0xf] }
  0x4e   :  { %457 = vmatpush.bf16.msra.mxu0 %v1288_v13  ;;  %470 = vmatpush.bf16.msra.mxu1 %v1292_v14  ;;  %v1376_v48 = vor.u32 %v1673_v45, %v1373_v46  ;;  %v1437_v49 = vld [vmem:[#allocation16 + $0xe8] sm:$0xf0]  ;;  %v1672_v52 = vld [vmem:[#allocation16 + $0x54] sm:$0xf0]  ;;  %v1427_v53 = vld [vmem:[#allocation16 + $0xd0] sm:$0xf] }
  0x4f   :  { %v1440_v50 = vor.u32 %v1689_v47, %v1437_v49  ;;  %v1364_v54 = vor.u32 %v1672_v52, %v1363_v51  ;;  %v1365_v57 = vld [vmem:[#allocation16 + $0x58] sm:$0xf0]  ;;  %v1687_v60 = vld [vmem:[#allocation16 + $0xd4] sm:$0xf]  ;;  %v1355_v63 = vld [vmem:[#allocation16 + $0x40] sm:$0xf] }
  0x50   :  { %v1429_v61 = vld [vmem:[#allocation16 + $0xd8] sm:$0xf0]  ;;  %v1670_v0 = vld [vmem:[#allocation16 + $0x44] sm:$0xf0]  ;;  %v1419_v1 = vld [vmem:[#allocation16 + $0xc0] sm:$0xf] }
  0x51   :  { %376 = vmatpush.bf16.msrb.mxu2 %v1278_v55  ;;  %389 = vmatpush.bf16.msrb.mxu3 %v1282_v56  ;;  %v1688_v55 = vld [vmem:[#allocation16 + $0xd4] sm:$0xf0]  ;;  %v1671_v56 = vld [vmem:[#allocation16 + $0x54] sm:$0xf]  ;;  %v1432_v62 = vor.u32 %v1687_v60, %v1429_v61  ;;  %v1356_v2 = vor.u32 %v1670_v0, %v1355_v63  ;;  %v1686_v3 = vld [vmem:[#allocation16 + $0xc4] sm:$0xf0] }
  0x52   :  { %1309 = vmatmul.msk.bf16.vlgmr.msra.gmra.mxu0 %vm290_vm1, %v398_v22  ;;  %1310 = vmatmul.msk.bf16.vlgmr.msra.gmra.mxu1 %vm290_vm1, %v398_v22  ;;  %v1428_v58 = vor.u32 %v1688_v55, %v1427_v53  ;;  %v1368_v59 = vor.u32 %v1671_v56, %v1365_v57  ;;  %v1669_v4 = vld [vmem:[#allocation16 + $0x44] sm:$0xf]  ;;  %v1357_v5 = vld [vmem:[#allocation16 + $0x48] sm:$0xf0]  ;;  %v1420_v6 = vor.u32 %v1686_v3, %v1419_v1  ;;  %v1347_v11 = vld [vmem:[#allocation16 + $0x30] sm:$0xf] }
  0x53   :  { %739 = vmatpush.bf16.msrb.mxu0 %v1380_v30  ;;  %752 = vmatpush.bf16.msrb.mxu1 %v1444_v34  ;;  %v1421_v9 = vld [vmem:[#allocation16 + $0xc8] sm:$0xf0]  ;;  %v1668_v12 = vld [vmem:[#allocation16 + $0x34] sm:$0xf0]  ;;  %v1411_v13 = vld [vmem:[#allocation16 + $0xb0] sm:$0xf] }
  0x54   :  { %v1348_v14 = vor.u32 %v1668_v12, %v1347_v11  ;;  %v1684_v15 = vld [vmem:[#allocation16 + $0xb4] sm:$0xf0]  ;;  %v1667_v16 = vld [vmem:[#allocation16 + $0x34] sm:$0xf]  ;;  %v1349_v17 = vld [vmem:[#allocation16 + $0x38] sm:$0xf0] }
  0x55   :  { %377 = vmatpush.bf16.msrb.mxu2 %v1270_v7  ;;  %390 = vmatpush.bf16.msrb.mxu3 %v1274_v8  ;;  %v1360_v7 = vor.u32 %v1669_v4, %v1357_v5  ;;  %v1685_v8 = vld [vmem:[#allocation16 + $0xc4] sm:$0xf]  ;;  %v1339_v22 = vld [vmem:[#allocation16 + $0x20] sm:$0xf]  ;;  %v1341_v30 = vld [vmem:[#allocation16 + $0x28] sm:$0xf0] }
  0x56   :  { %v1424_v10 = vor.u32 %v1685_v8, %v1421_v9  ;;  %v1403_v25 = vld [vmem:[#allocation16 + $0xa0] sm:$0xf]  ;;  %v1665_v29 = vld [vmem:[#allocation16 + $0x24] sm:$0xf]  ;;  %v1405_v33 = vld [vmem:[#allocation16 + $0xa8] sm:$0xf0] }
  0x57   :  { %740 = vmatpush.bf16.msrb.mxu0 %v1372_v43  ;;  %753 = vmatpush.bf16.msrb.mxu1 %v1436_v44  ;;  %v1681_v31 = vld [vmem:[#allocation16 + $0xa4] sm:$0xf]  ;;  %v1344_v32 = vor.u32 %v1665_v29, %v1341_v30  ;;  %v1664_v36 = vld [vmem:[#allocation16 + $0x14] sm:$0xf0]  ;;  %v1395_v37 = vld [vmem:[#allocation16 + $0x90] sm:$0xf] }
  0x58   :  { %v1408_v34 = vor.u32 %v1681_v31, %v1405_v33  ;;  %v1680_v41 = vld [vmem:[#allocation16 + $0x94] sm:$0xf0]  ;;  %v1663_v42 = vld [vmem:[#allocation16 + $0x14] sm:$0xf]  ;;  %v1333_v44 = vld [vmem:[#allocation16 + $0x18] sm:$0xf0] }
  0x59   :  { %378 = vmatpush.bf16.msrb.mxu2 %v1262_v18  ;;  %391 = vmatpush.bf16.msrb.mxu3 %v1266_v19  ;;  %v1412_v18 = vor.u32 %v1684_v15, %v1411_v13  ;;  %v1352_v19 = vor.u32 %v1667_v16, %v1349_v17  ;;  %v1396_v43 = vor.u32 %v1680_v41, %v1395_v37  ;;  %v1679_v45 = vld [vmem:[#allocation16 + $0x94] sm:$0xf]  ;;  %v1397_v47 = vld [vmem:[#allocation16 + $0x98] sm:$0xf0]  ;;  %v1323_v49 = vld [vmem:[#allocation16] sm:$0xf] }
  0x5a   :  { %v1336_v46 = vor.u32 %v1663_v42, %v1333_v44  ;;  %v1387_v51 = vld [vmem:[#allocation16 + $0x80] sm:$0xf]  ;;  %v1678_v53 = vld [vmem:[#allocation16 + $0x84] sm:$0xf0]  ;;  %v1325_v55 = vld [vmem:[#allocation16 + $0x8] sm:$0xf0] }
  0x5b   :  { %741 = vmatpush.bf16.msrb.mxu0 %v1364_v54  ;;  %754 = vmatpush.bf16.msrb.mxu1 %v1428_v58  ;;  %v1661_v54 = vld [vmem:[#allocation16 + $0x4] sm:$0xf]  ;;  %v1388_v56 = vor.u32 %v1678_v53, %v1387_v51  ;;  %v1507_v1 = vld [vmem:[#allocation17 + $0x70] sm:$0xf]  ;;  %v1707_v3 = vld [vmem:[#allocation17 + $0x74] sm:$0xf] }
  0x5c   :  { %1283 = vmatmul.msk.bf16.vlgmr.msrb.gmra.mxu2 %vm290_vm1, %v238_v24  ;;  %1284 = vmatmul.msk.bf16.vlgmr.msrb.gmra.mxu3 %vm290_vm1, %v238_v24  ;;  %v1666_v24 = vld [vmem:[#allocation16 + $0x24] sm:$0xf0]  ;;  %v1328_v57 = vor.u32 %v1661_v54, %v1325_v55  ;;  %v1677_v58 = vld [vmem:[#allocation16 + $0x84] sm:$0xf]  ;;  %v1509_v5 = vld [vmem:[#allocation17 + $0x78] sm:$0xf0] }
  0x5d   :  { %508 = vmatpush.bf16.msra.mxu2 %v496_v20  ;;  %521 = vmatpush.bf16.msra.mxu3 %v499_v21  ;;  %v1683_v20 = vld [vmem:[#allocation16 + $0xb4] sm:$0xf]  ;;  %v1413_v21 = vld [vmem:[#allocation16 + $0xb8] sm:$0xf0]  ;;  %v1340_v27 = vor.u32 %v1666_v24, %v1339_v22  ;;  %v1512_v8 = vor.u32 %v1707_v3, %v1509_v5  ;;  %v1705_v9 = vld [vmem:[#allocation17 + $0x64] sm:$0xf] }
  0x5e   :  { %v1416_v23 = vor.u32 %v1683_v20, %v1413_v21  ;;  %v1571_v11 = vld [vmem:[#allocation17 + $0xf0] sm:$0xf]  ;;  %v1724_v13 = vld [vmem:[#allocation17 + $0xf4] sm:$0xf0]  ;;  %v1573_v15 = vld [vmem:[#allocation17 + $0xf8] sm:$0xf0] }
  0x5f   :  { %742 = vmatpush.bf16.msrb.mxu0 %v1356_v2  ;;  %755 = vmatpush.bf16.msrb.mxu1 %v1420_v6  ;;  %v1708_v2 = vld [vmem:[#allocation17 + $0x74] sm:$0xf0]  ;;  %v1499_v6 = vld [vmem:[#allocation17 + $0x60] sm:$0xf]  ;;  %v1491_v21 = vld [vmem:[#allocation17 + $0x50] sm:$0xf] }
  0x60   :  { %v1508_v4 = vor.u32 %v1708_v2, %v1507_v1  ;;  %v1704_v22 = vld [vmem:[#allocation17 + $0x54] sm:$0xf0]  ;;  %v1493_v24 = vld [vmem:[#allocation17 + $0x58] sm:$0xf0]  ;;  %v1721_v30 = vld [vmem:[#allocation17 + $0xe4] sm:$0xf] }
  0x61   :  { %765 = vmatpush.bf16.msrb.mxu2 %v1384_v35  ;;  %778 = vmatpush.bf16.msrb.mxu3 %v1448_v39  ;;  %v1331_v35 = vld [vmem:[#allocation16 + $0x10] sm:$0xf]  ;;  %v1565_v31 = vld [vmem:[#allocation17 + $0xe8] sm:$0xf0]  ;;  %v1719_v41 = vld [vmem:[#allocation17 + $0xd4] sm:$0xf] }
  0x62   :  { %v1332_v40 = vor.u32 %v1664_v36, %v1331_v35  ;;  %v1568_v33 = vor.u32 %v1721_v30, %v1565_v31  ;;  %v1702_v35 = vld [vmem:[#allocation17 + $0x44] sm:$0xf0]  ;;  %v1555_v37 = vld [vmem:[#allocation17 + $0xd0] sm:$0xf]  ;;  %v1701_v42 = vld [vmem:[#allocation17 + $0x44] sm:$0xf] }
  0x63   :  { %743 = vmatpush.bf16.msrb.mxu0 %v1348_v14  ;;  %756 = vmatpush.bf16.msrb.mxu1 %v1412_v18  ;;  %v1723_v14 = vld [vmem:[#allocation17 + $0xf4] sm:$0xf]  ;;  %v1557_v44 = vld [vmem:[#allocation17 + $0xd8] sm:$0xf0]  ;;  %v1549_v51 = vld [vmem:[#allocation17 + $0xc8] sm:$0xf0] }
  0x64   :  { %v1576_v20 = vor.u32 %v1723_v14, %v1573_v15  ;;  %v1475_v53 = vld [vmem:[#allocation17 + $0x30] sm:$0xf]  ;;  %v1700_v54 = vld [vmem:[#allocation17 + $0x34] sm:$0xf0]  ;;  %v1699_v55 = vld [vmem:[#allocation17 + $0x34] sm:$0xf] }
  0x65   :  { %766 = vmatpush.bf16.msrb.mxu2 %v1376_v48  ;;  %779 = vmatpush.bf16.msrb.mxu3 %v1440_v50  ;;  %v1400_v48 = vor.u32 %v1679_v45, %v1397_v47  ;;  %v1662_v50 = vld [vmem:[#allocation16 + $0x4] sm:$0xf0]  ;;  %v1547_v47 = vld [vmem:[#allocation17 + $0xc0] sm:$0xf]  ;;  %v1697_v5 = vld [vmem:[#allocation17 + $0x24] sm:$0xf] }
  0x66   :  { %v1324_v52 = vor.u32 %v1662_v50, %v1323_v49  ;;  %v1718_v49 = vld [vmem:[#allocation17 + $0xc4] sm:$0xf0]  ;;  %v1717_v50 = vld [vmem:[#allocation17 + $0xc4] sm:$0xf]  ;;  %v1467_v1 = vld [vmem:[#allocation17 + $0x20] sm:$0xf] }
  0x67   :  { %744 = vmatpush.bf16.msrb.mxu0 %v1340_v27  ;;  %v1698_v2 = vld [vmem:[#allocation17 + $0x24] sm:$0xf0]  ;;  %v1695_v30 = vld [vmem:[#allocation17 + $0x14] sm:$0xf] }
  0x69   :  { %767 = vmatpush.bf16.msrb.mxu2 %v1368_v59  ;;  %780 = vmatpush.bf16.msrb.mxu3 %v1432_v62  ;;  %v1389_v59 = vld [vmem:[#allocation16 + $0x88] sm:$0xf0] }
  0x6a   :  { %v1392_v62 = vor.u32 %v1677_v58, %v1389_v59  ;;  %v1548_v59 = vor.u32 %v1718_v49, %v1547_v47  ;;  %v1712_v49 = vld [vmem:[#allocation17 + $0x94] sm:$0xf0] }
  0x6b   :  { %745 = vmatpush.bf16.msrb.mxu0 %v1332_v40  ;;  %v1720_v40 = vld [vmem:[#allocation17 + $0xd4] sm:$0xf0] }
  0x6c   :  { %1319 = vmatmul.msk.bf16.vlgmr.msra.gmra.mxu2 %vm490_vm3, %v479_v26  ;;  %1320 = vmatmul.msk.bf16.vlgmr.msra.gmra.mxu3 %vm490_vm3, %v479_v26  ;;  %v1682_v26 = vld [vmem:[#allocation16 + $0xa4] sm:$0xf0]  ;;  %v1556_v45 = vor.u32 %v1720_v40, %v1555_v37  ;;  %v1533_v40 = vld [vmem:[#allocation17 + $0xa8] sm:$0xf0] }
  0x6d   :  { %768 = vmatpush.bf16.msrb.mxu2 %v1360_v7  ;;  %781 = vmatpush.bf16.msrb.mxu3 %v1424_v10  ;;  %v1404_v28 = vor.u32 %v1682_v26, %v1403_v25  ;;  %v1706_v7 = vld [vmem:[#allocation17 + $0x64] sm:$0xf0]  ;;  %v1501_v10 = vld [vmem:[#allocation17 + $0x68] sm:$0xf0]  ;;  %v1563_v25 = vld [vmem:[#allocation17 + $0xe0] sm:$0xf] }
  0x6e   :  { %v1500_v12 = vor.u32 %v1706_v7, %v1499_v6  ;;  %v1504_v18 = vor.u32 %v1705_v9, %v1501_v10  ;;  %v1722_v26 = vld [vmem:[#allocation17 + $0xe4] sm:$0xf0]  ;;  %v1469_v6 = vld [vmem:[#allocation17 + $0x28] sm:$0xf0] }
  0x6f   :  { %757 = vmatpush.bf16.msrb.mxu1 %v1404_v28  ;;  %746 = vmatpush.bf16.msrb.mxu0 %v1324_v52  ;;  %v1564_v29 = vor.u32 %v1722_v26, %v1563_v25  ;;  %v529_v7 = vld [vmem:[%s2300_s8] sm:$0x3]  ;;  %v1472_v9 = vor.u32 %v1697_v5, %v1469_v6  ;;  %v1541_v26 = vld [vmem:[#allocation17 + $0xb8] sm:$0xf0] }
  0x70   :  { %v1729_v5 = vld [vmem:[#allocation20 + $0x20] sm:$0xff] }
  0x71   :  { %769 = vmatpush.bf16.msrb.mxu2 %v1352_v19  ;;  %782 = vmatpush.bf16.msrb.mxu3 %v1416_v23  ;;  %v1572_v19 = vor.u32 %v1724_v13, %v1571_v11  ;;  %v1703_v23 = vld [vmem:[#allocation17 + $0x54] sm:$0xf] }
  0x72   :  { %v1496_v36 = vor.u32 %v1703_v23, %v1493_v24  ;;  %v1715_v24 = vld [vmem:[#allocation17 + $0xb4] sm:$0xf] }
  0x73   :  { %758 = vmatpush.bf16.msrb.mxu1 %v1396_v43  ;;  %993 = vmatpush.bf16.msra.mxu0 %v1508_v4  ;;  %v1485_v43 = vld [vmem:[#allocation17 + $0x48] sm:$0xf0] }
  0x74   :  { %v1488_v52 = vor.u32 %v1701_v42, %v1485_v43  ;;  %v1451_v42 = vld [vmem:[#allocation17] sm:$0xf]  ;;  %v1694_v43 = vld [vmem:[#allocation17 + $0x4] sm:$0xf0] }
  0x75   :  { %770 = vmatpush.bf16.msrb.mxu2 %v1344_v32  ;;  %783 = vmatpush.bf16.msrb.mxu3 %v1408_v34  ;;  %v1492_v32 = vor.u32 %v1704_v22, %v1491_v21  ;;  %v1483_v34 = vld [vmem:[#allocation17 + $0x40] sm:$0xf] }
  0x77   :  { %759 = vmatpush.bf16.msrb.mxu1 %v1388_v56  ;;  %994 = vmatpush.bf16.msra.mxu0 %v1500_v12  ;;  %v1477_v56 = vld [vmem:[#allocation17 + $0x38] sm:$0xf0]  ;;  %v531_v12 = vperm.slane %v529_v7, 0 }
  0x79   :  { %771 = vmatpush.bf16.msrb.mxu2 %v1336_v46  ;;  %784 = vmatpush.bf16.msrb.mxu3 %v1400_v48  ;;  %v1560_v46 = vor.u32 %v1719_v41, %v1557_v44  ;;  %v1484_v48 = vor.u32 %v1702_v35, %v1483_v34  ;;  %v1531_v34 = vld [vmem:[#allocation17 + $0xa0] sm:$0xf]  ;;  %v1714_v35 = vld [vmem:[#allocation17 + $0xa4] sm:$0xf0]  ;;  %v1693_v44 = vld [vmem:[#allocation17 + $0x4] sm:$0xf] }
  0x7a   :  { %v1532_v37 = vor.u32 %v1714_v35, %v1531_v34 }
  0x7b   :  { %1006 = vmatpush.bf16.msra.mxu1 %v1572_v19  ;;  %995 = vmatpush.bf16.msra.mxu0 %v1492_v32  ;;  %v1461_v32 = vld [vmem:[#allocation17 + $0x18] sm:$0xf0] }
  0x7d   :  { %772 = vmatpush.bf16.msrb.mxu2 %v1328_v57  ;;  %785 = vmatpush.bf16.msrb.mxu3 %v1392_v62  ;;  %v1552_v62 = vor.u32 %v1717_v50, %v1549_v51  ;;  %v1711_v51 = vld [vmem:[#allocation17 + $0x94] sm:$0xf] }
  0x7f   :  { %1007 = vmatpush.bf16.msra.mxu1 %v1564_v29  ;;  %996 = vmatpush.bf16.msra.mxu0 %v1484_v48  ;;  %v1696_v29 = vld [vmem:[#allocation17 + $0x14] sm:$0xf0]  ;;  %v1523_v48 = vld [vmem:[#allocation17 + $0x90] sm:$0xf] }
  0x80   :  { %v1524_v50 = vor.u32 %v1712_v49, %v1523_v48 }
  0x81   :  { %1019 = vmatpush.bf16.msra.mxu2 %v1512_v8  ;;  %1032 = vmatpush.bf16.msra.mxu3 %v1576_v20  ;;  %v1468_v8 = vor.u32 %v1698_v2, %v1467_v1  ;;  %v1739_v1 = vld [vmem:[#allocation20 + $0x70] sm:$0xff]  ;;  %v1730_v2 = vld [vmem:[#allocation20 + $0x28] sm:$0xff] }
  0x83   :  { %1008 = vmatpush.bf16.msra.mxu1 %v1556_v45  ;;  %v1452_v45 = vor.u32 %v1694_v43, %v1451_v42 }
  0x85   :  { %1020 = vmatpush.bf16.msra.mxu2 %v1504_v18  ;;  %1033 = vmatpush.bf16.msra.mxu3 %v1568_v33  ;;  %v1464_v33 = vor.u32 %v1695_v30, %v1461_v32 }
  0x87   :  { %1009 = vmatpush.bf16.msra.mxu1 %v1548_v59 }
  0x89   :  { %1021 = vmatpush.bf16.msra.mxu2 %v1496_v36  ;;  %1034 = vmatpush.bf16.msra.mxu3 %v1560_v46  ;;  %v1713_v36 = vld [vmem:[#allocation17 + $0xa4] sm:$0xf]  ;;  %v1453_v46 = vld [vmem:[#allocation17 + $0x8] sm:$0xf0] }
  0x8a   :  { %v1536_v41 = vor.u32 %v1713_v36, %v1533_v40  ;;  %v1456_v47 = vor.u32 %v1693_v44, %v1453_v46 }
  0x8d   :  { %1022 = vmatpush.bf16.msra.mxu2 %v1488_v52  ;;  %1035 = vmatpush.bf16.msra.mxu3 %v1552_v62  ;;  %v1525_v52 = vld [vmem:[#allocation17 + $0x98] sm:$0xf0] }
  0x8e   :  { %v1732_v62 = vld [vmem:[#allocation20 + $0x38] sm:$0xff] }
  0xcf   :  { %v2265_v38 = vpop.f32.mrf.mxu2  ;;  %v2267_v39 = vpop.f32.mrf.mxu3 }
  0xd0   :  { %v2269_v60 = vpop.f32.mrf.mxu0  ;;  %v2271_v61 = vpop.f32.mrf.mxu1 }
  0xd7   :  { %v312_v63 = vpop.f32.mrf.mxu2  ;;  %v325_v0 = vpop.f32.mrf.mxu3 }
  0xd8   :  { %v461_v16 = vpop.f32.mrf.mxu0  ;;  %v474_v17 = vpop.f32.mrf.mxu1  ;;  %v1476_v63 = vor.u32 %v1700_v54, %v1475_v53  ;;  %v1480_v0 = vor.u32 %v1699_v55, %v1477_v56  ;;  %v1528_v53 = vor.u32 %v1711_v51, %v1525_v52  ;;  %v1515_v54 = vld [vmem:[#allocation17 + $0x80] sm:$0xf]  ;;  %v1710_v55 = vld [vmem:[#allocation17 + $0x84] sm:$0xf0]  ;;  %v1709_v56 = vld [vmem:[#allocation17 + $0x84] sm:$0xf] }
  0xd9   :  { %v1758_v51 = vld [vmem:[%s2306_s14] ss:$0 sm:$0xff] }
  0xda   :  { %997 = vmatpush.bf16.msra.mxu0 %v1476_v63  ;;  %1023 = vmatpush.bf16.msra.mxu2 %v1480_v0  ;;  %v1740_v63 = vld [vmem:[#allocation20 + $0x78] sm:$0xff]  ;;  %v1731_v0 = vld [vmem:[#allocation20 + $0x30] sm:$0xff] }
  0xde   :  { %998 = vmatpush.bf16.msra.mxu0 %v1468_v8  ;;  %1024 = vmatpush.bf16.msra.mxu2 %v1472_v9 }
  0xdf   :  { %v380_v27 = vpop.f32.mrf.mxu2  ;;  %v393_v28 = vpop.f32.mrf.mxu3 }
  0xe0   :  { %v381_v3 = vadd.f32 %v380_v27, %v2265_v38  ;;  %v394_v4 = vadd.f32 %v393_v28, %v2267_v39  ;;  %v532_v38 = vperm.slane %v529_v7, 1  ;;  %v1544_v27 = vor.u32 %v1715_v24, %v1541_v26  ;;  %v1459_v28 = vld [vmem:[#allocation17 + $0x10] sm:$0xf]  ;;  %v1728_v7 = vld [vmem:[#allocation20 + $0x18] sm:$0xff]  ;;  %v1725_v26 = vld [vmem:[#allocation20] sm:$0xff] }
  0xe1   :  { %v1460_v31 = vor.u32 %v1696_v29, %v1459_v28  ;;  %v1726_v24 = vld [vmem:[#allocation20 + $0x8] sm:$0xff]  ;;  %v1733_v28 = vld [vmem:[#allocation20 + $0x40] sm:$0xff]  ;;  %v827_v29 = vld [vmem:[#allocation19] sm:$0x3] }
  0xe2   :  { %v476_v10 = vadd.f32 %v2269_v60, %v381_v3  ;;  %v477_v11 = vadd.f32 %v2271_v61, %v394_v4  ;;  %v1539_v60 = vld [vmem:[#allocation17 + $0xb0] sm:$0xf]  ;;  %v1716_v61 = vld [vmem:[#allocation17 + $0xb4] sm:$0xf0]  ;;  %1036 = vmatpush.bf16.msra.mxu3 %v1544_v27  ;;  %1025 = vmatpush.bf16.msra.mxu2 %v1464_v33  ;;  %v573_v4 = vld [vmem:[%s2302_s10] sm:$0x3] }
  0xe3   :  { %v1540_v25 = vor.u32 %v1716_v61, %v1539_v60  ;;  %999 = vmatpush.bf16.msra.mxu0 %v1460_v31  ;;  %v1738_v3 = vld [vmem:[#allocation20 + $0x68] sm:$0xff]  ;;  %v575_v6 = vperm.slane %v573_v4, 0  ;;  %v1727_v60 = vld [vmem:[#allocation20 + $0x10] sm:$0xff]  ;;  %v1736_v61 = vld [vmem:[#allocation20 + $0x58] sm:$0xff]  ;;  %v829_v31 = vperm.slane %v827_v29, 0  ;;  %v830_v36 = vperm.slane %v827_v29, 1 }
  0xe4   :  { %v1734_v27 = vld [vmem:[#allocation20 + $0x48] sm:$0xff] }
  0xe5   :  { %1010 = vmatpush.bf16.msra.mxu1 %v1540_v25  ;;  %v1735_v25 = vld [vmem:[#allocation20 + $0x50] sm:$0xff] }
  0xe6   :  { %1037 = vmatpush.bf16.msra.mxu3 %v1536_v41  ;;  %1026 = vmatpush.bf16.msra.mxu2 %v1456_v47 }
  0xe7   :  { %v382_v57 = vpop.f32.mrf.mxu2  ;;  %v395_v58 = vpop.f32.mrf.mxu3  ;;  %1000 = vmatpush.bf16.msra.mxu0 %v1452_v45 }
  0xe8   :  { %v1516_v57 = vor.u32 %v1710_v55, %v1515_v54  ;;  %v1517_v58 = vld [vmem:[#allocation17 + $0x88] sm:$0xf0] }
  0xe9   :  { %1011 = vmatpush.bf16.msra.mxu1 %v1532_v37  ;;  %v1520_v59 = vor.u32 %v1709_v56, %v1517_v58 }
  0xea   :  { %1038 = vmatpush.bf16.msra.mxu3 %v1528_v53 }
  0xed   :  { %1012 = vmatpush.bf16.msra.mxu1 %v1524_v50 }
  0xee   :  { %1039 = vmatpush.bf16.msra.mxu3 %v1520_v59 }
  0xef   :  { %v510_v13 = vpop.f32.mrf.mxu2  ;;  %v523_v39 = vpop.f32.mrf.mxu3 }
  0xf0   :  { %v527_v14 = vadd.f32 %v510_v13, %v476_v10  ;;  %v528_v15 = vadd.f32 %v523_v39, %v477_v11 }
  0xf1   :  { %1013 = vmatpush.bf16.msra.mxu1 %v1516_v57 }
  0xf2   :  { %v535_v16 = vadd.f32 %v531_v12, %v527_v14  ;;  %v536_v17 = vadd.f32 %v532_v38, %v528_v15  ;;  %v576_v12 = vperm.slane %v573_v4, 1 }
  0xf4   :  { %v537_v18 = vmax.f32 %v535_v16, 0.0  ;;  %v538_v19 = vmax.f32 %v536_v17, 0.0 }
  0xf6   :  { %v539_v20 = vpack.c.bf16 %v537_v18, %v537_v18  ;;  %v540_v21 = vpack.c.bf16 %v538_v19, %v538_v19 }
  0xf7   :  { %v512_v22 = vpop.f32.mrf.mxu2  ;;  %v525_v23 = vpop.f32.mrf.mxu3 }
  0xf8   :  { %747 = vmatmul.bf16.vlgmr.msrb.gmra.mxu0 %v539_v20  ;;  %760 = vmatmul.bf16.vlgmr.msrb.gmra.mxu1 %v540_v21  ;;  %v1737_v23 = vld [vmem:[#allocation20 + $0x60] sm:$0xff] }
  0xf9   :  { %773 = vmatmul.bf16.vlgmr.msrb.gmra.mxu2 %v539_v20  ;;  %786 = vmatmul.bf16.vlgmr.msrb.gmra.mxu3 %v540_v21 }
  0xfa   :  { %1181 = vmatpush.bf16.msrb.mxu0 %v1732_v62  ;;  %1194 = vmatpush.bf16.msrb.mxu1 %v1740_v63 }
  0xfe   :  { %1182 = vmatpush.bf16.msrb.mxu0 %v1731_v0  ;;  %1195 = vmatpush.bf16.msrb.mxu1 %v1739_v1 }
 0x102   :  { %1183 = vmatpush.bf16.msrb.mxu0 %v1730_v2  ;;  %1196 = vmatpush.bf16.msrb.mxu1 %v1738_v3 }
 0x106   :  { %1184 = vmatpush.bf16.msrb.mxu0 %v1729_v5  ;;  %1197 = vmatpush.bf16.msrb.mxu1 %v1737_v23 }
 0x10a   :  { %1185 = vmatpush.bf16.msrb.mxu0 %v1728_v7  ;;  %1198 = vmatpush.bf16.msrb.mxu1 %v1736_v61 }
 0x10e   :  { %1186 = vmatpush.bf16.msrb.mxu0 %v1727_v60  ;;  %1199 = vmatpush.bf16.msrb.mxu1 %v1735_v25 }
 0x112   :  { %1187 = vmatpush.bf16.msrb.mxu0 %v1726_v24  ;;  %1200 = vmatpush.bf16.msrb.mxu1 %v1734_v27 }
 0x116   :  { %1188 = vmatpush.bf16.msrb.mxu0 %v1725_v26  ;;  %1201 = vmatpush.bf16.msrb.mxu1 %v1733_v28 }
 0x175   :  { %v748_v8 = vpop.f32.mrf.mxu0  ;;  %v761_v9 = vpop.f32.mrf.mxu1 }
 0x176   :  { %v749_v10 = vadd.f32 %v748_v8, %v575_v6 }
 0x178   :  { %v762_v11 = vadd.f32 %v761_v9, %v749_v10 }
 0x17a   :  { %v791_v38 = vmax.f32 %v762_v11, 0.0 }
 0x17c   :  { %v793_v13 = vpack.c.bf16 %v791_v38, %v791_v38  ;;  %v774_v39 = vpop.f32.mrf.mxu2  ;;  %v787_v14 = vpop.f32.mrf.mxu3 }
 0x17d   :  { %v775_v15 = vadd.f32 %v774_v39, %v576_v12  ;;  %v750_v16 = vpop.f32.mrf.mxu0  ;;  %v763_v17 = vpop.f32.mrf.mxu1 }
 0x17e   :  { %1001 = vmatmul.bf16.vlgmr.msra.gmra.mxu0 %v793_v13  ;;  %1027 = vmatmul.bf16.vlgmr.msra.gmra.mxu2 %v793_v13 }
 0x17f   :  { %v788_v18 = vadd.f32 %v787_v14, %v775_v15 }
 0x181   :  { %v792_v19 = vmax.f32 %v788_v18, 0.0 }
 0x183   :  { %v794_v20 = vpack.c.bf16 %v792_v19, %v792_v19 }
 0x184   :  { %v776_v21 = vpop.f32.mrf.mxu2  ;;  %v789_v22 = vpop.f32.mrf.mxu3 }
 0x185   :  { %1014 = vmatmul.bf16.vlgmr.msra.gmra.mxu1 %v794_v20  ;;  %1040 = vmatmul.bf16.vlgmr.msra.gmra.mxu3 %v794_v20 }
 0x1fb   :  { %v1002_v30 = vpop.f32.mrf.mxu0 }
 0x1fc   :  { %v1003_v32 = vadd.f32 %v1002_v30, %v829_v31 }
 0x201   :  { %v1028_v33 = vpop.f32.mrf.mxu2 }
 0x202   :  { %v1015_v34 = vpop.f32.mrf.mxu1  ;;  %v1029_v42 = vadd.f32 %v1028_v33, %v830_v36 }
 0x203   :  { %v1016_v35 = vadd.f32 %v1015_v34, %v1003_v32  ;;  %v1004_v37 = vpop.f32.mrf.mxu0 }
 0x205   :  { %v1045_v40 = vmax.f32 %v1016_v35, 0.0 }
 0x207   :  { %v1047_v41 = vpack.c.bf16 %v1045_v40, %v1045_v40 }
 0x208   :  { %v1041_v43 = vpop.f32.mrf.mxu3 }
 0x209   :  { %v1042_v44 = vadd.f32 %v1041_v43, %v1029_v42  ;;  %1189 = vmatmul.bf16.vlgmr.msrb.gmra.mxu0 %v1047_v41  ;;  %v1030_v45 = vpop.f32.mrf.mxu2 }
 0x20a   :  { %v1017_v46 = vpop.f32.mrf.mxu1 }
 0x20b   :  { %v1046_v47 = vmax.f32 %v1042_v44, 0.0 }
 0x20d   :  { %v1048_v48 = vpack.c.bf16 %v1046_v47, %v1046_v47 }
 0x20f   :  { %1202 = vmatmul.bf16.vlgmr.msrb.gmra.mxu1 %v1048_v48 }
 0x210   :  { %v1043_v49 = vpop.f32.mrf.mxu3 }
 0x286   :  { %v1190_v50 = vpop.f32.mrf.mxu0 }
 0x287   :  { %v1191_v52 = vadd.f32 %v1758_v51, %v1190_v50 }
 0x28c   :  { %v1203_v53 = vpop.f32.mrf.mxu1 }
 0x28d   :  { %v1204_v54 = vadd.f32 %v1203_v53, %v1191_v52 }
 0x28e   :  { %v1192_v55 = vpop.f32.mrf.mxu0 }
 0x28f   :  { %1207 = vst [vmem:[#allocation22] sm:$0xff] %v1204_v54 }
 0x294   :  { %v1205_v56 = vpop.f32.mrf.mxu1 }
 0x295   :  { %1211 = vsyncadd [#allocation4], 64  ;;  %s1214_s27 = sshll.u32 %s2307_s15, 4  ;;  %s2103_s28 = smov [#allocation22]   ;;  %s1215_s27 = int_to_ptr.hbm [resolvable:$true] %s1214_s27 }
 0x296   :  { %s1212_s29 = sshll.u32 %s2103_s28, 4  ;;  %s1213_s29 = int_to_ptr.vmem [resolvable:$true] %s1212_s29 }
 0x297   :  { %1220 = dma.vmem_to_hbm [thread:$0]  %s1213_s29, 64, %s1215_s27, [#allocation4], %s2088_s23, %s2088_s23, %s2089_s24  }
 0x298   :  { %2085 = dma.done.wait [#allocation4], 128  }
 0x299   :  { %2086 = vsyncadd [#allocation4], 4294967168 }
 0x29a   :  { %1225 = vsyncpa [#allocation3], 1 }
 0x29b   :  { %1226 = vsyncpa [#allocation6], 1 }
 0x29c   :  { %1227 = vsyncpa [#allocation9], 1 }
 0x29d   :  { %1228 = vsyncpa [#allocation12], 1 }
 0x29e   :  { %1229 = vsyncpa [#allocation15], 1 }
 0x29f   :  { %1230 = vsyncpa [#allocation18], 1 }
 0x2a0   :  { %1231 = vsyncpa [#allocation21], 1 }
 0x2a1   :  { %1232 = vsyncpa [#allocation4], 1 }

</bundles_post_ra>
